<compile_context>
chip_gen: v6e
topology: v6e:2x2x1
jax: 0.10.0
libtpu: 0.0.40
codegen_flags: <defaults>
</compile_context>

<pallas_src>
import functools

import jax
import jax.numpy as jnp
import numpy as np
from jax.experimental import pallas as pl
from jax.experimental.pallas import tpu as pltpu


def _round_up(x, m):
    return ((x + m - 1) // m) * m


# ---------------------------------------------------------------------------
# Kernel 1: row-tiled L2 normalization (rsqrt, no sqrt+divide).  bf16 output.
# ---------------------------------------------------------------------------
def _l2norm_kernel(x_ref, o_ref):
    x = x_ref[...].astype(jnp.float32)
    ss = jnp.sum(x * x, axis=1, keepdims=True)
    o_ref[...] = (x * jax.lax.rsqrt(jnp.maximum(ss, 1e-24))).astype(o_ref.dtype)


def _l2_normalize(x, tm, cparams, out_dtype=jnp.bfloat16):
    bp, dp = x.shape
    return pl.pallas_call(
        _l2norm_kernel,
        out_shape=jax.ShapeDtypeStruct((bp, dp), out_dtype),
        grid=(bp // tm,),
        in_specs=[pl.BlockSpec((tm, dp), lambda i: (i, 0))],
        out_specs=pl.BlockSpec((tm, dp), lambda i: (i, 0)),
        compiler_params=cparams,
    )(x)


# ---------------------------------------------------------------------------
# Kernel 2: spatial InfoNCE contrastive loss, tiled over query rows.
# ---------------------------------------------------------------------------
def _spatial_kernel(q_ref, k_ref, fcol_ref, frow_ref, loss_ref, valid_ref,
                    *, inv_temp, threshold, batch, tm):
    i = pl.program_id(0)

    # Cosine-similarity block [tm, Bp] on the MXU.  Contraction expressed via
    # dot_general on dim 1 of both operands (no explicit transpose); bf16
    # operands, f32 accumulation, default precision.
    sim = jax.lax.dot_general(
        q_ref[...], k_ref[...],
        dimension_numbers=(((1,), (1,)), ((), ())),
        preferred_element_type=jnp.float32)
    bp = sim.shape[1]

    # exp((sim - 1)/T): shift by the (known) diagonal value so exp arguments
    # are <= 0 -> no f32 overflow for small temperatures.  The InfoNCE ratio
    # is shift-invariant, so this matches the reference exactly.
    exp_l = jnp.exp((sim - 1.0) * inv_temp)

    row_g = i * tm + jax.lax.broadcasted_iota(jnp.int32, (tm, bp), 0)
    col_g = jax.lax.broadcasted_iota(jnp.int32, (tm, bp), 1)
    keep = (row_g != col_g) & (col_g < batch)        # off-diagonal, real cols

    # Pairwise positive mask from state features: all VPU compares,
    # no divides / sqrt (cross-multiplied & squared-distance forms).
    fcol = fcol_ref[...]                             # [tm, 8]
    frow = frow_ref[...]                             # [8, Bp]
    one_m_thr = 1.0 - threshold

    vel_i = fcol[:, 0:1]
    vel_j = frow[0:1, :]
    vden = jnp.maximum(jnp.abs(vel_i) + jnp.abs(vel_j) + 1e-8, 1.0)
    ok_vel = jnp.abs(vel_i - vel_j) <= one_m_thr * vden   # 1-|dv|/den >= thr

    dx = fcol[:, 1:2] - frow[1:2, :]
    dy = fcol[:, 2:3] - frow[2:3, :]
    ok_pos = dx * dx + dy * dy <= 2500.0                  # dist <= 50

    ok_net = jnp.abs(fcol[:, 3:4] - frow[3:4, :]) <= one_m_thr
    ok_cpu = jnp.abs(fcol[:, 4:5] - frow[4:5, :]) <= one_m_thr

    pos_feat = ok_vel & ok_pos & ok_net & ok_cpu

    exp_nd = jnp.where(keep, exp_l, 0.0)             # diag + padded cols zeroed
    pos_sum = jnp.sum(jnp.where(pos_feat, exp_nd, 0.0), axis=1, keepdims=True)
    neg_sum = jnp.sum(exp_nd, axis=1, keepdims=True)
    denom = pos_sum + neg_sum     # positives double-counted, matching torch ref

    row_ok = (i * tm + jax.lax.broadcasted_iota(jnp.int32, (tm, 1), 0)) < batch
    valid = (pos_sum > 0.0) & row_ok

    safe_pos = jnp.where(valid, pos_sum, 1.0)
    safe_den = jnp.where(valid, denom, 1.0)
    loss_ref[...] = jnp.where(valid, -jnp.log(safe_pos / safe_den), 0.0)
    valid_ref[...] = valid.astype(jnp.float32)


# ---------------------------------------------------------------------------
# Kernel 3: temporal continuity distance (1 - cosine) per row.
# ---------------------------------------------------------------------------
def _temporal_kernel(cur_ref, prev_ref, out_ref):
    c = cur_ref[...].astype(jnp.float32)      # already L2-normalized (bf16)
    p = prev_ref[...].astype(jnp.float32)     # raw previous embeddings
    ss = jnp.sum(p * p, axis=1, keepdims=True)
    p_n = p * jax.lax.rsqrt(jnp.maximum(ss, 1e-24))
    out_ref[...] = 1.0 - jnp.sum(c * p_n, axis=1, keepdims=True)


# ---------------------------------------------------------------------------
# Wrapper: EnhancedContrastiveLoss.forward
# ---------------------------------------------------------------------------
def enhanced_contrastive_loss(current_embeddings, velocity, position,
                              network_quality, cpu_usage,
                              previous_embeddings=None,
                              temperature=0.1, similarity_threshold=0.8,
                              temporal_weight=0.1, temporal_alpha=0.9):
    """Returns (total_loss, spatial_loss, temporal_loss) like the PyTorch module."""
    B, D = current_embeddings.shape
    # TODO(synk): ContrastiveLoss(reduce=False) (ragged per-valid-row loss
    # vector) is not exposed; only the reduced scalar path used by
    # EnhancedContrastiveLoss is implemented.

    # Pad D to a lane multiple and B to the row tile; zero padding is exact for
    # norms / dot products and padded rows/cols are masked inside the kernels.
    Dp = _round_up(D, 128)
    if B <= 128:
        Bp = _round_up(max(B, 8), 8)
        TM = Bp                                   # single row block
    else:
        Bp = _round_up(B, 128)
        TM = 128                                  # sized for v7x's 64 MiB VMEM
    grid = (Bp // TM,)
    cparams = pltpu.CompilerParams(
        dimension_semantics=("parallel",),        # megacore-shardable on v7x
        vmem_limit_bytes=48 * 1024 * 1024)

    emb_p = jnp.zeros((Bp, Dp), jnp.float32).at[:B, :D].set(
        current_embeddings.astype(jnp.float32))
    emb_n = _l2_normalize(emb_p, TM, cparams)     # [Bp, Dp] bf16

    # ---- spatial InfoNCE contrastive loss ----------------------------------
    if B < 2:
        spatial_loss = jnp.asarray(0.0, jnp.float32)
    else:
        # Single [8, Bp] feature slab: vel, pos_x, pos_y, net, cpu, 0, 0, 0.
        feats_rows = jnp.zeros((8, Bp), jnp.float32)
        feats_rows = feats_rows.at[0, :B].set(velocity.astype(jnp.float32))
        feats_rows = feats_rows.at[1, :B].set(position[:, 0].astype(jnp.float32))
        feats_rows = feats_rows.at[2, :B].set(position[:, 1].astype(jnp.float32))
        feats_rows = feats_rows.at[3, :B].set(network_quality.astype(jnp.float32))
        feats_rows = feats_rows.at[4, :B].set(cpu_usage.astype(jnp.float32))
        feats_cols = feats_rows.T                 # [Bp, 8] (glue transpose)

        kernel = functools.partial(
            _spatial_kernel,
            inv_temp=float(1.0 / temperature),
            threshold=float(similarity_threshold),
            batch=int(B), tm=int(TM))
        losses, valid = pl.pallas_call(
            kernel,
            out_shape=(jax.ShapeDtypeStruct((Bp, 1), jnp.float32),
                       jax.ShapeDtypeStruct((Bp, 1), jnp.float32)),
            grid=grid,
            in_specs=[pl.BlockSpec((TM, Dp), lambda i: (i, 0)),   # query rows
                      pl.BlockSpec((Bp, Dp), lambda i: (0, 0)),   # all keys
                      pl.BlockSpec((TM, 8), lambda i: (i, 0)),    # row features
                      pl.BlockSpec((8, Bp), lambda i: (0, 0))],   # col features
            out_specs=(pl.BlockSpec((TM, 1), lambda i: (i, 0)),
                       pl.BlockSpec((TM, 1), lambda i: (i, 0))),
            compiler_params=cparams,
        )(emb_n, emb_n, feats_cols, feats_rows)

        n_valid = jnp.sum(valid)
        spatial_loss = jnp.where(
            n_valid > 0.0, jnp.sum(losses) / jnp.maximum(n_valid, 1.0), 0.0)

    # ---- temporal continuity loss ------------------------------------------
    if previous_embeddings is None:
        temporal_loss = jnp.asarray(0.0, jnp.float32)
    else:
        prev_p = jnp.zeros((Bp, Dp), jnp.float32).at[:B, :D].set(
            previous_embeddings.astype(jnp.float32))
        dist = pl.pallas_call(
            _temporal_kernel,
            out_shape=jax.ShapeDtypeStruct((Bp, 1), jnp.float32),
            grid=grid,
            in_specs=[pl.BlockSpec((TM, Dp), lambda i: (i, 0)),
                      pl.BlockSpec((TM, Dp), lambda i: (i, 0))],
            out_specs=pl.BlockSpec((TM, 1), lambda i: (i, 0)),
            compiler_params=cparams,
        )(emb_n, prev_p)
        temporal_loss = temporal_alpha * jnp.mean(dist[:B, 0])

    total_loss = spatial_loss + temporal_weight * temporal_loss
    return total_loss, spatial_loss, temporal_loss


# ---------------------------------------------------------------------------
# NumPy (float64) replica of the PyTorch forward for verification.
# ---------------------------------------------------------------------------
def _reference_enhanced(emb, vel, pos, net, cpu, prev,
                        temperature=0.1, thr=0.8,
                        temporal_weight=0.1, alpha=0.9):
    emb = np.asarray(emb, dtype=np.float64)
    vel = np.asarray(vel, dtype=np.float64)
    pos = np.asarray(pos, dtype=np.float64)
    net = np.asarray(net, dtype=np.float64)
    cpu = np.asarray(cpu, dtype=np.float64)
    B = emb.shape[0]

    # spatial ContrastiveLoss.forward (reduce=True)
    if B < 2:
        spatial = 0.0
    else:
        e = emb / np.maximum(np.linalg.norm(emb, axis=1, keepdims=True), 1e-12)
        logits = (e @ e.T) / temperature
        positive = np.zeros((B, B), dtype=bool)
        for i in range(B):
            for j in range(i + 1, B):
                ok = True
                vs = 1.0 - abs(vel[i] - vel[j]) / max(abs(vel[i]) + abs(vel[j]) + 1e-8, 1.0)
                if vs < thr:
                    ok = False
                if np.linalg.norm(pos[i] - pos[j]) > 50.0:
                    ok = False
                if 1.0 - abs(net[i] - net[j]) < thr:
                    ok = False
                if 1.0 - abs(cpu[i] - cpu[j]) < thr:
                    ok = False
                if ok:
                    positive[i, j] = positive[j, i] = True
        not_eye = ~np.eye(B, dtype=bool)
        losses = []
        for i in range(B):
            p = logits[i][positive[i]]
            if p.size == 0:
                continue
            n = logits[i][not_eye[i]]
            pe, ne = np.exp(p).sum(), np.exp(n).sum()
            losses.append(-np.log(pe / (pe + ne)))
        spatial = float(np.mean(losses)) if losses else 0.0

    # temporal similarity loss
    if prev is None:
        temporal = 0.0
    else:
        prev = np.asarray(prev, dtype=np.float64)
        e_t = emb / np.maximum(np.linalg.norm(emb, axis=1, keepdims=True), 1e-12)
        e_p = prev / np.maximum(np.linalg.norm(prev, axis=1, keepdims=True), 1e-12)
        temporal = alpha * float(np.mean(1.0 - np.sum(e_t * e_p, axis=1)))

    total = spatial + temporal_weight * temporal
    return total, spatial, temporal


if __name__ == "__main__":
    key = jax.random.PRNGKey(0)
    k1, k2, k3, k4, k5, k6 = jax.random.split(key, 6)

    B, D = 8, 32
    embeddings = jax.random.normal(k1, (B, D), dtype=jnp.float32)
    previous = jax.random.normal(k6, (B, D), dtype=jnp.float32)
    velocity = jax.random.uniform(k2, (B,), minval=1.0, maxval=10.0)
    position = jax.random.uniform(k3, (B, 2), minval=0.0, maxval=20.0)
    network_quality = jax.random.uniform(k4, (B,), minval=0.45, maxval=0.55)
    cpu_usage = jax.random.uniform(k5, (B,), minval=0.40, maxval=0.55)

    total, spatial, temporal = enhanced_contrastive_loss(
        embeddings, velocity, position, network_quality, cpu_usage,
        previous_embeddings=previous)
    total = jax.block_until_ready(total)
    spatial = jax.block_until_ready(spatial)
    temporal = jax.block_until_ready(temporal)

    ref_total, ref_spatial, ref_temporal = _reference_enhanced(
        embeddings, velocity, position, network_quality, cpu_usage, previous)

    # Default (bf16-input) MXU precision for the cosine-similarity matmul per
    # the perf review: ~1e-3 error per cosine -> up to ~1% on the InfoNCE loss.
    np.testing.assert_allclose(np.asarray(spatial), ref_spatial, rtol=2e-2, atol=1e-3)
    np.testing.assert_allclose(np.asarray(temporal), ref_temporal, rtol=2e-2, atol=1e-3)
    np.testing.assert_allclose(np.asarray(total), ref_total, rtol=2e-2, atol=1e-3)

    print("KERNEL_OK")
</pallas_src>

<mosaic_0001>
module attributes {stable_mosaic.version = 11 : i64} {
  func.func @_l2norm_kernel(%arg0: i32, %arg1: memref<8x128xf32, #tpu.memory_space<vmem>>, %arg2: memref<8x128xbf16, #tpu.memory_space<vmem>>) attributes {dimension_semantics = [#tpu.dimension_semantics<parallel>], iteration_bounds = array<i64: 1>, scalar_prefetch = 0 : i64, scratch_operands = 0 : i64, tpu.core_type = #tpu.core_type<tc>, window_params = [{transform_indices = @transform_0, window_bounds = array<i64: 8, 128>}, {transform_indices = @transform_1, window_bounds = array<i64: 8, 128>}]} {
    %c0 = arith.constant 0 : index
    %c0_0 = arith.constant 0 : index
    %0 = vector.load %arg1[%c0, %c0_0] : memref<8x128xf32, #tpu.memory_space<vmem>>, vector<8x128xf32>
    %1 = arith.mulf %0, %0 : vector<8x128xf32>
    %cst = arith.constant dense<0.000000e+00> : vector<8xf32>
    %2 = vector.multi_reduction <add>, %1, %cst [1] : vector<8x128xf32> to vector<8xf32>
    %3 = vector.shape_cast %2 : vector<8xf32> to vector<8x1xf32>
    %cst_1 = arith.constant 1.000000e-24 : f32
    %4 = vector.broadcast %cst_1 : f32 to vector<8x1xf32>
    %5 = arith.maximumf %3, %4 : vector<8x1xf32>
    %6 = math.rsqrt %5 : vector<8x1xf32>
    %7 = vector.broadcast %6 : vector<8x1xf32> to vector<8x128xf32>
    %8 = arith.mulf %0, %7 : vector<8x128xf32>
    %9 = arith.truncf %8 : vector<8x128xf32> to vector<8x128xbf16>
    %c0_2 = arith.constant 0 : index
    %c0_3 = arith.constant 0 : index
    %10 = vector.load %arg2[%c0_2, %c0_3] : memref<8x128xbf16, #tpu.memory_space<vmem>>, vector<8x128xbf16>
    tpu.vector_store %arg2[%c0_2, %c0_3], %9 {strides = array<i32>} : memref<8x128xbf16, #tpu.memory_space<vmem>>, vector<8x128xbf16>,
    return
  }
  func.func @transform_0(%arg0: i32) -> (i32, i32) {
    %c0_i32 = arith.constant 0 : i32
    %c0_i32_0 = arith.constant 0 : i32
    return %arg0, %c0_i32 : i32, i32
  }
  func.func @transform_1(%arg0: i32) -> (i32, i32) {
    %c0_i32 = arith.constant 0 : i32
    %c0_i32_0 = arith.constant 0 : i32
    return %arg0, %c0_i32 : i32, i32
  }
}

</mosaic_0001>

<bundles_post_ra>
// kernel: tpu_custom_call.1
= control target key start
LH: loop header
LB: loop body
LE: loop exit
PB: predicated region body
PF: predicated region fallthrough
CT: control target
= control target key end

     0   :  { %6 = vsyncpa [#allocation3], 0  ;;  %s111_s0 = inlined_call_operand.hbm [shape: f32[8,128], index: 0, kind: input, shape index: {}]   ;;  %s112_s1 = inlined_call_operand.hbm [shape: bf16[8,128], index: 1, kind: output, shape index: {}]  }
   0x1   :  { %7 = vsyncpa [#allocation4], 0  ;;  %s93_s6 = smov [#allocation2]  }
   0x2   :  { %s14_s7 = sshll.u32 %s93_s6, 4  ;;  %s15_s7 = int_to_ptr.vmem [resolvable:$true] %s14_s7 }
   0x3   :  { %s57_s8 = scalar_lea.vmem %s15_s7, 128  ;;  %p62_p1 = scmp.lt.s32.totalorder %s15_s7, %s15_s7 }
   0x4   :  { %p58_p0 = scmp.ne.s32.totalorder %s15_s7, %s57_s8  ;;  %p63_p2 = scmp.lt.s32.totalorder %s57_s8, %s57_s8 }
   0x6   :  { %p64_p3 = por %p63_p2, %p62_p1 }
   0x8   :  { %p65_p4 = pnand %p64_p3, %p58_p0 }
   0xa   :  { %68 = shalt.err (!%p65_p4)
}
   0xb   :  { %17 = dma.hbm_to_vmem [thread:$0]  %s111_s0, 128, %s15_s7, [#allocation3]  }
   0xc   :  { %89 = dma.done.wait [#allocation3], 128  }
   0xd   :  { %90 = vsyncadd [#allocation3], 4294967168  ;;  %v21_v0 = vld [vmem:[#allocation2] sm:$0xff]  ;;  %s94_s11 = smov [#allocation5]  }
   0xe   :  { %v22_v1 = vmul.f32 %v21_v0, %v21_v0  ;;  %s36_s12 = sshll.u32 %s94_s11, 4  ;;  %s37_s12 = int_to_ptr.vmem [resolvable:$true] %s36_s12 }
   0xf   :  { %s69_s13 = scalar_lea.vmem %s37_s12, 64  ;;  %p74_p6 = scmp.lt.s32.totalorder %s37_s12, %s37_s12 }
  0x10   :  { %23 = vadd.xlane.f32.xlu0 %v22_v1  ;;  %p70_p5 = scmp.ne.s32.totalorder %s37_s12, %s69_s13  ;;  %p75_p7 = scmp.lt.s32.totalorder %s69_s13, %s69_s13 }
  0x12   :  { %p76_p8 = por %p75_p7, %p74_p6 }
  0x14   :  { %p77_p9 = pnand %p76_p8, %p70_p5 }
  0x99   :  { %v24_v2 = vpop.xlane.xlu0 %23 }
  0x9a   :  { %v25_v3 = vmax.f32 %v24_v2, 1e-24 }
  0x9c   :  { %47 = vrsqrt.f32 %v25_v3 }
  0xa9   :  { %v48_v4 = vpop.eup %47 }
  0xaa   :  { %v27_v5 = vmul.f32 %v48_v4, %v21_v0 }
  0xac   :  { %v28_v6 = vpack.c.bf16 %v27_v5, %v27_v5 }
  0xae   :  { %29 = vst [vmem:[#allocation5] sm:$0xf] %v28_v6 }
  0xaf   :  { %80 = shalt.err (!%p77_p9)
}
  0xb0   :  { %39 = dma.vmem_to_hbm [thread:$0]  %s37_s12, 64, %s112_s1, [#allocation4]  }
  0xb1   :  { %91 = dma.done.wait [#allocation4], 64  }
  0xb2   :  { %92 = vsyncadd [#allocation4], 4294967232 }
  0xb3   :  { %43 = vsyncpa [#allocation3], 1 }
  0xb4   :  { %44 = vsyncpa [#allocation4], 1 }

</bundles_post_ra>
